<compile_context>
chip_gen: v6e
topology: v6e:2x2x1
jax: 0.10.0
libtpu: 0.0.40
codegen_flags: <defaults>
</compile_context>

<pallas_src>
import functools

import jax
import jax.numpy as jnp
from jax import lax
from jax.experimental import pallas as pl
from jax.experimental.pallas import tpu as pltpu


def _round_up(x, m):
    return ((x + m - 1) // m) * m


def _pick_tile(dim, cap, unit=128):
    """Largest multiple of `unit` <= cap that divides `dim` (dim % unit == 0)."""
    t = max(unit, (min(cap, dim) // unit) * unit)
    while dim % t:
        t -= unit
    return t


# ----------------------------------------------------------------------------
# Kernels:  o = x @ w.T + b   with x:[tm,tk], w:[tn,tk]  (PyTorch Linear layout)
# ----------------------------------------------------------------------------
_TRANS_B = (((1,), (1,)), ((), ()))   # contract x dim 1 with w dim 1


def _linear_kernel_single_k(x_ref, w_ref, b_ref, o_ref):
    # K fits in a single block: no scratch accumulator round trip.
    acc = lax.dot_general(x_ref[...], w_ref[...], _TRANS_B,
                          preferred_element_type=jnp.float32)
    o_ref[...] = (acc + b_ref[...].astype(jnp.float32)).astype(o_ref.dtype)


def _linear_kernel_multi_k(x_ref, w_ref, b_ref, o_ref, acc_ref):
    k = pl.program_id(2)

    @pl.when(k == 0)
    def _():
        # Seed the accumulator with the broadcast bias (saves a final add pass).
        acc_ref[...] = jnp.broadcast_to(b_ref[...].astype(jnp.float32),
                                        acc_ref.shape)

    acc_ref[...] += lax.dot_general(x_ref[...], w_ref[...], _TRANS_B,
                                    preferred_element_type=jnp.float32)

    @pl.when(k == pl.num_programs(2) - 1)
    def _():
        o_ref[...] = acc_ref[...].astype(o_ref.dtype)


def linear_pallas(x, weight, bias, *, tm_cap=256, tn_cap=512, tk_cap=512):
    """x: [M, K], weight: [E, K] (PyTorch nn.Linear layout), bias: [E] -> [M, E]."""
    M, K = x.shape
    E, Kw = weight.shape
    assert K == Kw, (K, Kw)

    # Tile selection + padding:
    #   * M padded to a multiple of tm (tm is a multiple of 8, capped).
    #   * N (embedding) padded to a multiple of 128 -> lane-dense output stores.
    #   * K padded with zeros on both operands (no effect on the dot).
    # In a real model the (small) weight/bias pads would be folded into the
    # parameters once at init instead of per call.
    tm = min(tm_cap, _round_up(M, 8))
    Mp = _round_up(M, tm)
    Np = _round_up(E, 128)
    Kp = _round_up(K, 128)
    tn = _pick_tile(Np, tn_cap)
    tk = _pick_tile(Kp, tk_cap)

    xp = jnp.pad(x, ((0, Mp - M), (0, Kp - K))) if (Mp != M or Kp != K) else x
    wp = (jnp.pad(weight, ((0, Np - E), (0, Kp - K)))
          if (Np != E or Kp != K) else weight)
    bp = (jnp.pad(bias, (0, Np - E)) if Np != E else bias).reshape(1, Np)

    nm, nn, nk = Mp // tm, Np // tn, Kp // tk
    itemsize = jnp.dtype(x.dtype).itemsize
    cost = pl.CostEstimate(
        flops=2 * Mp * Np * Kp,
        transcendentals=0,
        bytes_accessed=itemsize * (Mp * Kp + Np * Kp + Mp * Np),
    )

    if nk == 1:
        out = pl.pallas_call(
            _linear_kernel_single_k,
            out_shape=jax.ShapeDtypeStruct((Mp, Np), x.dtype),
            grid_spec=pltpu.PrefetchScalarGridSpec(
                num_scalar_prefetch=0,
                grid=(nm, nn),
                in_specs=[
                    pl.BlockSpec((tm, tk), lambda i, j: (i, 0)),
                    pl.BlockSpec((tn, tk), lambda i, j: (j, 0)),
                    pl.BlockSpec((1, tn), lambda i, j: (0, j)),
                ],
                out_specs=pl.BlockSpec((tm, tn), lambda i, j: (i, j)),
            ),
            compiler_params=pltpu.CompilerParams(
                dimension_semantics=("parallel", "parallel")),
            cost_estimate=cost,
        )(xp, wp, bp)
    else:
        out = pl.pallas_call(
            _linear_kernel_multi_k,
            out_shape=jax.ShapeDtypeStruct((Mp, Np), x.dtype),
            grid_spec=pltpu.PrefetchScalarGridSpec(
                num_scalar_prefetch=0,
                grid=(nm, nn, nk),
                in_specs=[
                    pl.BlockSpec((tm, tk), lambda i, j, k: (i, k)),
                    pl.BlockSpec((tn, tk), lambda i, j, k: (j, k)),
                    pl.BlockSpec((1, tn), lambda i, j, k: (0, j)),
                ],
                out_specs=pl.BlockSpec((tm, tn), lambda i, j, k: (i, j)),
                scratch_shapes=[pltpu.VMEM((tm, tn), jnp.float32)],
            ),
            compiler_params=pltpu.CompilerParams(
                dimension_semantics=("parallel", "parallel", "arbitrary")),
            cost_estimate=cost,
        )(xp, wp, bp)

    return out[:M, :E] if (Mp != M or Np != E) else out


# ----------------------------------------------------------------------------
# PatchEmbedding forward
# ----------------------------------------------------------------------------
def rearrange_patches(x, patch_size):
    """'b c (h p1) (w p2) -> b (h w) (p1 p2 c)'  (single fused XLA copy)."""
    B, C, H, W = x.shape
    p = patch_size
    assert H % p == 0 and W % p == 0
    h, w = H // p, W // p
    x = x.reshape(B, C, h, p, w, p)
    x = jnp.transpose(x, (0, 2, 4, 3, 5, 1))        # -> [B, h, w, p1, p2, C]
    return x.reshape(B, h * w, p * p * C)


@functools.partial(jax.jit, static_argnames=("patch_size",))
def patch_embedding(x, weight, bias, patch_size):
    """weight: [emb_size, C*p*p] (PyTorch nn.Linear layout), bias: [emb_size]."""
    B = x.shape[0]
    patches = rearrange_patches(x, patch_size)       # [B, P, K]
    _, P, K = patches.shape
    E = weight.shape[0]
    flat = patches.reshape(B * P, K)
    out = linear_pallas(flat, weight, bias)          # x @ W.T + b, no weight.T copy
    return out.reshape(B, P, E)


# ----------------------------------------------------------------------------
# Demo / correctness check
# ----------------------------------------------------------------------------
if __name__ == "__main__":
    def run_case(B, C, H, W, patch_size, emb_size, key):
        K = C * patch_size * patch_size
        kx, kw, kb = jax.random.split(key, 3)
        x = jax.random.normal(kx, (B, C, H, W), dtype=jnp.float32)
        # PyTorch-style Linear init: uniform(-1/sqrt(K), 1/sqrt(K)).
        bound = 1.0 / (K ** 0.5)
        weight = jax.random.uniform(kw, (emb_size, K), jnp.float32, -bound, bound)
        bias = jax.random.uniform(kb, (emb_size,), jnp.float32, -bound, bound)

        out = jax.block_until_ready(patch_embedding(x, weight, bias, patch_size))
        P = (H // patch_size) * (W // patch_size)
        assert out.shape == (B, P, emb_size), out.shape

        ref = rearrange_patches(x, patch_size) @ weight.T + bias
        assert jnp.allclose(out, ref, atol=1e-4, rtol=1e-4), \
            float(jnp.max(jnp.abs(out - ref)))

    key = jax.random.PRNGKey(0)
    k1, k2 = jax.random.split(key)

    # Small demo shape (single-K-step fast path, no scratch).
    run_case(B=2, C=4, H=16, W=16, patch_size=8, emb_size=32, key=k1)
    # Slightly larger shape exercising the multi-K-step accumulator kernel and
    # the M / N padding paths (K = 768 -> 2 K-steps, E = 100 -> padded to 128).
    run_case(B=3, C=3, H=32, W=32, patch_size=16, emb_size=100, key=k2)

    print("KERNEL_OK")
</pallas_src>

<mosaic_0001>
module attributes {stable_mosaic.version = 11 : i64} {
  func.func @_linear_kernel_single_k(%arg0: i32, %arg1: i32, %arg2: memref<8x256xf32, #tpu.memory_space<vmem>>, %arg3: memref<128x256xf32, #tpu.memory_space<vmem>>, %arg4: memref<1x128xf32, #tpu.memory_space<vmem>>, %arg5: memref<8x128xf32, #tpu.memory_space<vmem>>) attributes {dimension_semantics = [#tpu.dimension_semantics<parallel>, #tpu.dimension_semantics<parallel>], iteration_bounds = array<i64: 1, 1>, scalar_prefetch = 0 : i64, scratch_operands = 0 : i64, tpu.core_type = #tpu.core_type<tc>, window_params = [{transform_indices = @transform_0, window_bounds = array<i64: 8, 256>}, {transform_indices = @transform_1, window_bounds = array<i64: 128, 256>}, {transform_indices = @transform_2, window_bounds = array<i64: 1, 128>}, {transform_indices = @transform_3, window_bounds = array<i64: 8, 128>}]} {
    %c0 = arith.constant 0 : index
    %c0_0 = arith.constant 0 : index
    %0 = vector.load %arg2[%c0, %c0_0] : memref<8x256xf32, #tpu.memory_space<vmem>>, vector<8x256xf32>
    %c0_1 = arith.constant 0 : index
    %c0_2 = arith.constant 0 : index
    %1 = vector.load %arg3[%c0_1, %c0_2] : memref<128x256xf32, #tpu.memory_space<vmem>>, vector<128x256xf32>
    %cst = arith.constant dense<0.000000e+00> : vector<8x128xf32>
    %2 = tpu.matmul %0, %1, %cst {dimension_numbers = #tpu.dot_dimension_numbers<[1], [1], [0], [0], [0, 0, 1, 0], [], []>} : vector<8x256xf32>, vector<128x256xf32>, vector<8x128xf32> -> vector<8x128xf32>
    %c0_3 = arith.constant 0 : index
    %c0_4 = arith.constant 0 : index
    %3 = vector.load %arg4[%c0_3, %c0_4] : memref<1x128xf32, #tpu.memory_space<vmem>>, vector<1x128xf32>
    %4 = vector.broadcast %3 : vector<1x128xf32> to vector<8x128xf32>
    %5 = arith.addf %2, %4 : vector<8x128xf32>
    %c0_5 = arith.constant 0 : index
    %c0_6 = arith.constant 0 : index
    %6 = vector.load %arg5[%c0_5, %c0_6] : memref<8x128xf32, #tpu.memory_space<vmem>>, vector<8x128xf32>
    tpu.vector_store %arg5[%c0_5, %c0_6], %5 {strides = array<i32>} : memref<8x128xf32, #tpu.memory_space<vmem>>, vector<8x128xf32>,
    return
  }
  func.func @transform_0(%arg0: i32, %arg1: i32) -> (i32, i32) {
    %c0_i32 = arith.constant 0 : i32
    %c0_i32_0 = arith.constant 0 : i32
    return %arg0, %c0_i32 : i32, i32
  }
  func.func @transform_1(%arg0: i32, %arg1: i32) -> (i32, i32) {
    %c0_i32 = arith.constant 0 : i32
    %c0_i32_0 = arith.constant 0 : i32
    return %arg1, %c0_i32 : i32, i32
  }
  func.func @transform_2(%arg0: i32, %arg1: i32) -> (i32, i32) {
    %c0_i32 = arith.constant 0 : i32
    %c0_i32_0 = arith.constant 0 : i32
    return %c0_i32, %arg1 : i32, i32
  }
  func.func @transform_3(%arg0: i32, %arg1: i32) -> (i32, i32) {
    %c0_i32 = arith.constant 0 : i32
    return %arg0, %arg1 : i32, i32
  }
}

</mosaic_0001>

<bundles_post_ra>
// kernel: patch_embedding.1
= control target key start
LH: loop header
LB: loop body
LE: loop exit
PB: predicated region body
PF: predicated region fallthrough
CT: control target
= control target key end

     0   :  { %s294_s0 = inlined_call_operand.vmem [shape: f32[8,256], index: 0, kind: input, shape index: {}]   ;;  %s295_s1 = inlined_call_operand.vmem [shape: f32[128,256], index: 1, kind: input, shape index: {}]   ;;  %s296_s2 = inlined_call_operand.vmem [shape: f32[1,128], index: 2, kind: input, shape index: {}]   ;;  %s297_s3 = inlined_call_operand.hbm [shape: f32[8,128], index: 3, kind: output, shape index: {}]  }
   0x1   :  { %v48_v0 = vld [vmem:[%s295_s1 + $0xf8] sm:$0xff]  ;;  %v47_v1 = vld [vmem:[%s295_s1 + $0xf0] sm:$0xff]  ;;  %v46_v2 = vld [vmem:[%s295_s1 + $0xe8] sm:$0xff] }
   0x2   :  { %56 = vmatprep.subr.mxu0 %v48_v0  ;;  %v45_v3 = vld [vmem:[%s295_s1 + $0xe0] sm:$0xff]  ;;  %v44_v4 = vld [vmem:[%s295_s1 + $0xd8] sm:$0xff]  ;;  %v43_v5 = vld [vmem:[%s295_s1 + $0xd0] sm:$0xff] }
   0x3   :  { %57 = vmatpush1.xpose.msra.mxu0 %v47_v1  ;;  %v42_v6 = vld [vmem:[%s295_s1 + $0xc8] sm:$0xff]  ;;  %v41_v8 = vld [vmem:[%s295_s1 + $0xc0] sm:$0xff] }
   0x4   :  { %58 = vmatprep.subr.mxu0 %v46_v2  ;;  %v16_v7 = vld [vmem:[%s294_s0 + $0x8] sm:$0xff] }
   0x5   :  { %120 = vmatprep.mubr.f32.mxu0 %v16_v7 }
   0x7   :  { %59 = vmatpush1.xpose.msra.mxu0 %v45_v3 }
   0x8   :  { %60 = vmatprep.subr.mxu0 %v44_v4 }
   0xb   :  { %61 = vmatpush1.xpose.msra.mxu0 %v43_v5 }
   0xc   :  { %62 = vmatprep.subr.mxu0 %v42_v6 }
   0xd   :  { %8 = vsyncpa [#allocation3], 0  ;;  %v40_v9 = vld [vmem:[%s295_s1 + $0xb8] sm:$0xff]  ;;  %v39_v10 = vld [vmem:[%s295_s1 + $0xb0] sm:$0xff]  ;;  %s165_s28 = smov [#allocation2]  }
   0xe   :  { %v38_v11 = vld [vmem:[%s295_s1 + $0xa8] sm:$0xff]  ;;  %v37_v12 = vld [vmem:[%s295_s1 + $0xa0] sm:$0xff]  ;;  %v36_v13 = vld [vmem:[%s295_s1 + $0x98] sm:$0xff]  ;;  %s133_s29 = sshll.u32 %s165_s28, 4  ;;  %s134_s29 = int_to_ptr.vmem [resolvable:$true] %s133_s29 }
   0xf   :  { %63 = vmatpush1.xpose.msra.mxu0 %v41_v8  ;;  %v35_v14 = vld [vmem:[%s295_s1 + $0x90] sm:$0xff]  ;;  %v34_v15 = vld [vmem:[%s295_s1 + $0x88] sm:$0xff]  ;;  %v33_v16 = vld [vmem:[%s295_s1 + $0x80] sm:$0xff]  ;;  %s143_s30 = scalar_lea.vmem %s134_s29, 128  ;;  %p148_p1 = scmp.lt.s32.totalorder %s134_s29, %s134_s29 }
  0x10   :  { %64 = vmatprep.subr.mxu0 %v40_v9  ;;  %v32_v17 = vld [vmem:[%s295_s1 + $0x78] sm:$0xff]  ;;  %v31_v18 = vld [vmem:[%s295_s1 + $0x70] sm:$0xff]  ;;  %v30_v19 = vld [vmem:[%s295_s1 + $0x68] sm:$0xff]  ;;  %p144_p0 = scmp.ne.s32.totalorder %s134_s29, %s143_s30  ;;  %p149_p2 = scmp.lt.s32.totalorder %s143_s30, %s143_s30 }
  0x11   :  { %v29_v20 = vld [vmem:[%s295_s1 + $0x60] sm:$0xff]  ;;  %v28_v21 = vld [vmem:[%s295_s1 + $0x58] sm:$0xff]  ;;  %v27_v22 = vld [vmem:[%s295_s1 + $0x50] sm:$0xff] }
  0x12   :  { %v26_v23 = vld [vmem:[%s295_s1 + $0x48] sm:$0xff]  ;;  %v25_v24 = vld [vmem:[%s295_s1 + $0x40] sm:$0xff]  ;;  %v24_v25 = vld [vmem:[%s295_s1 + $0x38] sm:$0xff]  ;;  %p150_p3 = por %p149_p2, %p148_p1 }
  0x13   :  { %65 = vmatpush1.xpose.msra.mxu0 %v39_v10  ;;  %v23_v26 = vld [vmem:[%s295_s1 + $0x30] sm:$0xff]  ;;  %v22_v27 = vld [vmem:[%s295_s1 + $0x28] sm:$0xff]  ;;  %v21_v28 = vld [vmem:[%s295_s1 + $0x20] sm:$0xff] }
  0x14   :  { %66 = vmatprep.subr.mxu0 %v38_v11  ;;  %v20_v29 = vld [vmem:[%s295_s1 + $0x18] sm:$0xff]  ;;  %v19_v30 = vld [vmem:[%s295_s1 + $0x10] sm:$0xff]  ;;  %v18_v31 = vld [vmem:[%s295_s1 + $0x8] sm:$0xff]  ;;  %p151_p4 = pnand %p150_p3, %p144_p0 }
  0x15   :  { %v17_v32 = vld [vmem:[%s295_s1] sm:$0xff] }
  0x16   :  { %v15_v33 = vld [vmem:[%s294_s0] sm:$0xff] }
  0x17   :  { %67 = vmatpush1.xpose.msra.mxu0 %v37_v12  ;;  %v141_v34 = vld [vmem:[%s296_s2] ss:$0 sm:$0xff] }
  0x18   :  { %68 = vmatprep.subr.mxu0 %v36_v13 }
  0x1b   :  { %69 = vmatpush1.xpose.msra.mxu0 %v35_v14 }
  0x1c   :  { %70 = vmatprep.subr.mxu0 %v34_v15 }
  0x1f   :  { %71 = vmatpush1.xpose.msra.mxu0 %v33_v16 }
  0x20   :  { %72 = vmatprep.subr.mxu0 %v32_v17 }
  0x23   :  { %73 = vmatpush1.xpose.msra.mxu0 %v31_v18 }
  0x24   :  { %74 = vmatprep.subr.mxu0 %v30_v19 }
  0x27   :  { %75 = vmatpush1.xpose.msra.mxu0 %v29_v20 }
  0x28   :  { %76 = vmatprep.subr.mxu0 %v28_v21 }
  0x2b   :  { %77 = vmatpush1.xpose.msra.mxu0 %v27_v22 }
  0x2c   :  { %78 = vmatprep.subr.mxu0 %v26_v23 }
  0x2f   :  { %79 = vmatpush1.xpose.msra.mxu0 %v25_v24 }
  0x30   :  { %80 = vmatprep.subr.mxu0 %v24_v25 }
  0x33   :  { %81 = vmatpush1.xpose.msra.mxu0 %v23_v26 }
  0x34   :  { %82 = vmatprep.subr.mxu0 %v22_v27 }
  0x37   :  { %83 = vmatpush1.xpose.msra.mxu0 %v21_v28 }
  0x38   :  { %84 = vmatprep.subr.mxu0 %v20_v29 }
  0x3b   :  { %85 = vmatpush1.xpose.msra.mxu0 %v19_v30 }
  0x3c   :  { %86 = vmatprep.subr.mxu0 %v18_v31 }
  0x3f   :  { %87 = vmatpush1.xpose.msra.mxu0 %v17_v32 }
  0x42   :  { %121 = vmatmul.mubr.f32.vlgmr.msra.gmra.mxu0 %v15_v33 }
 0x102   :  { %v122_v35 = vpop.f32.mrf.mxu0 }
 0x103   :  { %v123_v36 = vadd.f32 %v141_v34, %v122_v35 }
 0x104   :  { %v124_v37 = vpop.f32.mrf.mxu0 }
 0x105   :  { %126 = vst [vmem:[#allocation2] sm:$0xff] %v123_v36 }
 0x106   :  { %154 = shalt.err (!%p151_p4)
}
 0x107   :  { %136 = dma.vmem_to_hbm [thread:$0]  %s134_s29, 128, %s297_s3, [#allocation3]  }
 0x108   :  { %163 = dma.done.wait [#allocation3], 128  }
 0x109   :  { %164 = vsyncadd [#allocation3], 4294967168 }
 0x10a   :  { %140 = vsyncpa [#allocation3], 1 }

</bundles_post_ra>
